<compile_context>
chip_gen: v5e
topology: v5e:2x2
jax: 0.10.0
libtpu: 0.0.40
codegen_flags: <defaults>
</compile_context>

<pallas_src>
import functools

import jax
import jax.numpy as jnp
from jax import lax
from jax.experimental import pallas as pl
from jax.experimental.pallas import tpu as pltpu


def _compiler_params(dimension_semantics):
    """Raise the scoped-VMEM limit (safely capped by the chip's capacity)."""
    vmem_limit = None
    try:
        cap = pltpu.get_tpu_info().vmem_capacity_bytes
        vmem_limit = min(int(cap * 3 // 4), 96 << 20)
    except Exception:
        vmem_limit = None
    return pltpu.CompilerParams(dimension_semantics=dimension_semantics,
                                vmem_limit_bytes=vmem_limit)


def _pick_row_tile(H, W, target_rows=512):
    th = 1
    for cand in range(1, H + 1):
        if H % cand == 0 and cand * W <= target_rows:
            th = cand
    return th


# ----------------------------------------------------------------------------
# Kernel 1: GroupNorm statistics -> per-channel scale/shift
#   grid = (N, T); T is the (reduction) row-tile axis, accumulated in scratch.
#   scale = rstd_g * gamma_c ;  shift = beta_c - mean_g * rstd_g * gamma_c
# so the conv kernel can apply GN as a single fused multiply-add.
# ----------------------------------------------------------------------------
def _gn_stats_kernel(x_ref, g_ref, b_ref, pcg_ref, pgc_ref,
                     scale_ref, shift_ref, s1_ref, s2_ref, *, cnt, eps):
    t = pl.program_id(1)

    @pl.when(t == 0)
    def _():
        s1_ref[...] = jnp.zeros_like(s1_ref)
        s2_ref[...] = jnp.zeros_like(s2_ref)

    x = x_ref[0].astype(jnp.float32)                         # (rows, C)
    s1_ref[...] += jnp.sum(x, axis=0, keepdims=True)         # fp32 per-channel sums
    s2_ref[...] += jnp.sum(x * x, axis=0, keepdims=True)

    @pl.when(t == pl.num_programs(1) - 1)
    def _():
        # per-channel -> per-group via small (C,G) indicator, broadcast back via (G,C)
        sg1 = jnp.dot(s1_ref[...], pcg_ref[...], preferred_element_type=jnp.float32)
        sg2 = jnp.dot(s2_ref[...], pcg_ref[...], preferred_element_type=jnp.float32)
        mean_g = sg1 * (1.0 / cnt)
        var_g = sg2 * (1.0 / cnt) - mean_g * mean_g          # biased var (matches torch)
        rstd_g = lax.rsqrt(var_g + eps)
        mean_c = jnp.dot(mean_g, pgc_ref[...], preferred_element_type=jnp.float32)
        rstd_c = jnp.dot(rstd_g, pgc_ref[...], preferred_element_type=jnp.float32)
        sc = rstd_c * g_ref[...]
        scale_ref[0] = sc
        shift_ref[0] = b_ref[...] - mean_c * sc


def gn_scale_shift(x_flat, gamma, beta, *, num_groups=32, eps=1e-6, rows_per_tile):
    N, HW, C = x_flat.shape
    assert C % num_groups == 0
    cs = C // num_groups
    assert HW % rows_per_tile == 0
    T = HW // rows_per_tile

    gid = jnp.arange(C) // cs
    pcg = (gid[:, None] == jnp.arange(num_groups)[None, :]).astype(jnp.float32)
    pgc = pcg.T

    kern = functools.partial(_gn_stats_kernel, cnt=float(HW * cs), eps=eps)
    scale, shift = pl.pallas_call(
        kern,
        out_shape=(jax.ShapeDtypeStruct((N, 1, C), jnp.float32),
                   jax.ShapeDtypeStruct((N, 1, C), jnp.float32)),
        grid=(N, T),
        in_specs=[
            pl.BlockSpec((1, rows_per_tile, C), lambda n, t: (n, t, 0)),
            pl.BlockSpec((1, C), lambda n, t: (0, 0)),
            pl.BlockSpec((1, C), lambda n, t: (0, 0)),
            pl.BlockSpec((C, num_groups), lambda n, t: (0, 0)),
            pl.BlockSpec((num_groups, C), lambda n, t: (0, 0)),
        ],
        out_specs=(pl.BlockSpec((1, 1, C), lambda n, t: (n, 0, 0)),
                   pl.BlockSpec((1, 1, C), lambda n, t: (n, 0, 0))),
        scratch_shapes=[pltpu.VMEM((1, C), jnp.float32),
                        pltpu.VMEM((1, C), jnp.float32)],
        compiler_params=_compiler_params(("parallel", "arbitrary")),
    )(x_flat, gamma.reshape(1, C), beta.reshape(1, C), pcg, pgc)
    return scale, shift


# ----------------------------------------------------------------------------
# Kernel 2: fused GN-apply + swish + 3x3 conv (+ optional shortcut epilogue)
#   Row-tiled: each grid step (n, t) gets TH "body" rows of the zero-padded
#   input plus a 2-row halo side input, applies the precomputed per-channel
#   GN scale/shift + swish, zeroes the conv padding border, and performs the
#   3x3 conv as 3 matmuls of K = 3*Cin (dx taps concatenated along channels).
#   shortcut == "nin":  out += xs @ Wn + bn   (1x1 conv) ; "identity": out += xs
# ----------------------------------------------------------------------------
def _fused_conv_kernel(xb_ref, hx_ref, sc_ref, sh_ref, w_ref, b_ref, *rest,
                       H, W, TH, shortcut):
    if shortcut == "nin":
        xs_ref, wn_ref, bn_ref, o_ref = rest
    elif shortcut == "identity":
        xs_ref, o_ref = rest
    else:
        (o_ref,) = rest

    Cin = xb_ref.shape[-1]
    Cout = w_ref.shape[-1]
    t = pl.program_id(1)
    row_start = t * TH                     # first padded row held by this tile

    body = xb_ref[0]                       # (TH, W+2, Cin)
    halo = hx_ref[0]                       # (2,  W+2, Cin)
    a = jnp.concatenate([body, halo], axis=0).astype(jnp.float32)  # (TH+2, W+2, Cin)

    # GroupNorm (precomputed per-channel scale/shift) + swish.
    a = a * sc_ref[...] + sh_ref[...]
    a = a * jax.nn.sigmoid(a)

    # Conv2d zero-pads the *activated* input, so zero the padding border after
    # the nonlinearity (padded rows/cols of the raw input are zeros, but GN
    # maps them to a nonzero constant).
    iy = lax.broadcasted_iota(jnp.int32, (TH + 2, W + 2), 0) + row_start
    ix = lax.broadcasted_iota(jnp.int32, (TH + 2, W + 2), 1)
    valid = (iy >= 1) & (iy <= H) & (ix >= 1) & (ix <= W)
    a = jnp.where(valid[:, :, None], a, 0.0)
    a = a.astype(w_ref.dtype)

    # 3x3 conv: for each dy, concat the 3 dx taps along channels and do one
    # (TH*W, 3*Cin) x (3*Cin, Cout) matmul; accumulate in fp32.
    acc = jnp.zeros((TH * W, Cout), jnp.float32)
    for dy in range(3):
        rows = a[dy:dy + TH]                                     # (TH, W+2, Cin)
        cat = jnp.concatenate(
            [rows[:, 0:W], rows[:, 1:W + 1], rows[:, 2:W + 2]], axis=-1)
        acc = acc + jnp.dot(cat.reshape(TH * W, 3 * Cin), w_ref[dy],
                            preferred_element_type=jnp.float32)
    acc = acc + b_ref[...]

    if shortcut == "nin":
        xs = xs_ref[0].astype(wn_ref.dtype)
        acc = acc + jnp.dot(xs, wn_ref[...],
                            preferred_element_type=jnp.float32) + bn_ref[...]
    elif shortcut == "identity":
        acc = acc + xs_ref[0].astype(jnp.float32)

    o_ref[0] = acc.astype(o_ref.dtype)


def fused_gn_swish_conv3x3(x_nhwc, scale, shift, w_hwio, b, *, row_tile,
                           x_shortcut=None, wn=None, bn=None):
    N, H, W, Cin = x_nhwc.shape
    Cout = w_hwio.shape[-1]
    TH = row_tile
    assert H % TH == 0
    T = H // TH

    # Single zero-padded copy of the activation (the only extra HBM pass) plus
    # a tiny per-tile 2-row halo so row tiles can be plain blocked inputs.
    xpad = jnp.pad(x_nhwc, ((0, 0), (1, 1), (1, 1), (0, 0)))       # (N, H+2, W+2, Cin)
    halo = jnp.stack(
        [xpad[:, t * TH + TH: t * TH + TH + 2] for t in range(T)], axis=1)
    halo = halo.reshape(N, 2 * T, W + 2, Cin)                      # pair t -> rows [2t, 2t+2)
    w3 = w_hwio.reshape(3, 3 * Cin, Cout)                          # dx taps grouped along K

    if wn is not None:
        shortcut = "nin"
    elif x_shortcut is not None:
        shortcut = "identity"
    else:
        shortcut = "none"

    in_specs = [
        pl.BlockSpec((1, TH, W + 2, Cin), lambda n, t: (n, t, 0, 0)),      # body rows
        pl.BlockSpec((1, 2, W + 2, Cin), lambda n, t: (n, t, 0, 0)),       # 2-row halo
        pl.BlockSpec((1, 1, Cin), lambda n, t: (n, 0, 0)),                 # GN scale
        pl.BlockSpec((1, 1, Cin), lambda n, t: (n, 0, 0)),                 # GN shift
        pl.BlockSpec((3, 3 * Cin, Cout), lambda n, t: (0, 0, 0)),          # conv weights
        pl.BlockSpec((1, Cout), lambda n, t: (0, 0)),                      # conv bias
    ]
    args = [xpad, halo, scale, shift, w3, b.reshape(1, Cout)]
    if shortcut != "none":
        cs_in = x_shortcut.shape[-1]
        in_specs.append(pl.BlockSpec((1, TH * W, cs_in), lambda n, t: (n, t, 0)))
        args.append(x_shortcut)
    if shortcut == "nin":
        in_specs += [pl.BlockSpec(wn.shape, lambda n, t: (0, 0)),
                     pl.BlockSpec((1, Cout), lambda n, t: (0, 0))]
        args += [wn, bn.reshape(1, Cout)]

    kern = functools.partial(_fused_conv_kernel, H=H, W=W, TH=TH, shortcut=shortcut)
    return pl.pallas_call(
        kern,
        out_shape=jax.ShapeDtypeStruct((N, H * W, Cout), x_nhwc.dtype),
        grid=(N, T),
        in_specs=in_specs,
        out_specs=pl.BlockSpec((1, TH * W, Cout), lambda n, t: (n, t, 0)),
        compiler_params=_compiler_params(("parallel", "parallel")),
    )(*args)


# ----------------------------------------------------------------------------
# ResnetBlock forward (conv_shortcut=False, temb_channels=0 -> temb=None,
# dropout identity in eval). NCHW in/out to match the PyTorch module.
# ----------------------------------------------------------------------------
def resnet_block_forward(x_nchw, params, *, num_groups=32, eps=1e-6, row_tile=None):
    N, Cin, H, W = x_nchw.shape
    Cout = params["w1"].shape[-1]
    TH = row_tile if row_tile is not None else _pick_row_tile(H, W)
    assert H % TH == 0

    # NCHW -> NHWC (channels on the lane axis). If the surrounding model were
    # NHWC end-to-end these two transposes would disappear.
    x_nhwc = jnp.transpose(x_nchw, (0, 2, 3, 1))
    x_flat = x_nhwc.reshape(N, H * W, Cin)

    # norm1 stats, then fused GN1 + swish + conv1
    sc1, sh1 = gn_scale_shift(x_flat, params["gamma1"], params["beta1"],
                              num_groups=num_groups, eps=eps, rows_per_tile=TH * W)
    h1 = fused_gn_swish_conv3x3(x_nhwc, sc1, sh1, params["w1"], params["b1"],
                                row_tile=TH)                       # (N, HW, Cout)
    # temb is None (temb_channels=0): no temb_proj branch.
    # TODO(synk): nn.Dropout is identity in eval mode; no dropout applied here.

    # norm2 stats, then fused GN2 + swish + conv2 with the shortcut folded into
    # the epilogue (1x1 nin_shortcut when Cin != Cout, else identity residual).
    sc2, sh2 = gn_scale_shift(h1, params["gamma2"], params["beta2"],
                              num_groups=num_groups, eps=eps, rows_per_tile=TH * W)
    h1_nhwc = h1.reshape(N, H, W, Cout)
    if "wn" in params:
        out_flat = fused_gn_swish_conv3x3(
            h1_nhwc, sc2, sh2, params["w2"], params["b2"], row_tile=TH,
            x_shortcut=x_flat, wn=params["wn"], bn=params["bn"])
    else:
        out_flat = fused_gn_swish_conv3x3(
            h1_nhwc, sc2, sh2, params["w2"], params["b2"], row_tile=TH,
            x_shortcut=x_flat)

    out = out_flat.reshape(N, H, W, Cout)
    return jnp.transpose(out, (0, 3, 1, 2))                        # back to NCHW


# ----------------------------------------------------------------------------
# Pure-JAX reference for correctness checking
# ----------------------------------------------------------------------------
def _ref_forward(x, p, num_groups=32, eps=1e-6):
    def gn(h, g, b):
        N, C, H, W = h.shape
        hg = h.reshape(N, num_groups, -1)
        m = hg.mean(axis=-1, keepdims=True)
        v = hg.var(axis=-1, keepdims=True)
        hn = ((hg - m) * jax.lax.rsqrt(v + eps)).reshape(N, C, H, W)
        return hn * g[None, :, None, None] + b[None, :, None, None]

    def swish(h):
        return h * jax.nn.sigmoid(h)

    def conv(h, w, b):
        y = jax.lax.conv_general_dilated(
            h, w, (1, 1), "SAME",
            dimension_numbers=("NCHW", "HWIO", "NCHW"),
            precision=jax.lax.Precision.HIGHEST)
        return y + b[None, :, None, None]

    h = conv(swish(gn(x, p["gamma1"], p["beta1"])), p["w1"], p["b1"])
    h = conv(swish(gn(h, p["gamma2"], p["beta2"])), p["w2"], p["b2"])
    xs = jnp.einsum("nchw,cd->ndhw", x, p["wn"],
                    precision=jax.lax.Precision.HIGHEST)
    xs = xs + p["bn"][None, :, None, None]
    return xs + h


if __name__ == "__main__":
    # Channels are multiples of 32 (GroupNorm groups); Cout=128 keeps every
    # output store lane-dense. row_tile=8 -> 2 spatial tiles per image so the
    # halo/tiling path is exercised.
    N, Cin, Cout, H, W = 2, 64, 128, 16, 16
    key = jax.random.PRNGKey(0)
    ks = jax.random.split(key, 11)

    params = {
        "gamma1": 1.0 + 0.1 * jax.random.normal(ks[0], (Cin,), jnp.float32),
        "beta1": 0.1 * jax.random.normal(ks[1], (Cin,), jnp.float32),
        "w1": jax.random.normal(ks[2], (3, 3, Cin, Cout), jnp.float32) / (3.0 * 3.0 * Cin) ** 0.5,
        "b1": 0.01 * jax.random.normal(ks[3], (Cout,), jnp.float32),
        "gamma2": 1.0 + 0.1 * jax.random.normal(ks[4], (Cout,), jnp.float32),
        "beta2": 0.1 * jax.random.normal(ks[5], (Cout,), jnp.float32),
        "w2": jax.random.normal(ks[6], (3, 3, Cout, Cout), jnp.float32) / (3.0 * 3.0 * Cout) ** 0.5,
        "b2": 0.01 * jax.random.normal(ks[7], (Cout,), jnp.float32),
        "wn": jax.random.normal(ks[8], (Cin, Cout), jnp.float32) / Cin ** 0.5,
        "bn": 0.01 * jax.random.normal(ks[9], (Cout,), jnp.float32),
    }
    x = jax.random.normal(ks[10], (N, Cin, H, W), jnp.float32)

    out = resnet_block_forward(x, params, row_tile=8)
    out = jax.block_until_ready(out)
    assert out.shape == (N, Cout, H, W), out.shape

    ref = _ref_forward(x, params)
    err = float(jnp.max(jnp.abs(out - ref)))
    if err > 5e-3:
        raise AssertionError(f"Pallas output mismatch vs reference, max abs err = {err}")

    print("KERNEL_OK")
</pallas_src>

<mosaic_0001>
module attributes {stable_mosaic.version = 11 : i64} {
  func.func @_gn_stats_kernel(%arg0: i32, %arg1: i32, %arg2: memref<1x128x64xf32, #tpu.memory_space<vmem>>, %arg3: memref<1x64xf32, #tpu.memory_space<vmem>>, %arg4: memref<1x64xf32, #tpu.memory_space<vmem>>, %arg5: memref<64x32xf32, #tpu.memory_space<vmem>>, %arg6: memref<32x64xf32, #tpu.memory_space<vmem>>, %arg7: memref<1x1x64xf32, #tpu.memory_space<vmem>>, %arg8: memref<1x1x64xf32, #tpu.memory_space<vmem>>, %arg9: memref<1x64xf32, #tpu.memory_space<vmem>>, %arg10: memref<1x64xf32, #tpu.memory_space<vmem>>) attributes {dimension_semantics = [#tpu.dimension_semantics<parallel>, #tpu.dimension_semantics<arbitrary>], iteration_bounds = array<i64: 2, 2>, scalar_prefetch = 0 : i64, scratch_operands = 2 : i64, tpu.core_type = #tpu.core_type<tc>, window_params = [{transform_indices = @transform_0, window_bounds = array<i64: 1, 128, 64>}, {pipeline_mode = #tpu.pipeline_mode<synchronous>, transform_indices = @transform_1, window_bounds = array<i64: 1, 64>}, {pipeline_mode = #tpu.pipeline_mode<synchronous>, transform_indices = @transform_2, window_bounds = array<i64: 1, 64>}, {pipeline_mode = #tpu.pipeline_mode<synchronous>, transform_indices = @transform_3, window_bounds = array<i64: 64, 32>}, {pipeline_mode = #tpu.pipeline_mode<synchronous>, transform_indices = @transform_4, window_bounds = array<i64: 32, 64>}, {transform_indices = @transform_5, window_bounds = array<i64: 1, 1, 64>}, {transform_indices = @transform_6, window_bounds = array<i64: 1, 1, 64>}]} {
    %c0_i32 = arith.constant 0 : i32
    %0 = arith.cmpi eq, %arg1, %c0_i32 : i32
    %1 = arith.extui %0 : i1 to i32
    %c0_i32_0 = arith.constant 0 : i32
    %2 = arith.cmpi ne, %1, %c0_i32_0 : i32
    scf.if %2 {
      %cst_13 = arith.constant 0.000000e+00 : f32
      %19 = vector.broadcast %cst_13 : f32 to vector<1x64xf32>
      %c0_14 = arith.constant 0 : index
      %c0_15 = arith.constant 0 : index
      %20 = vector.load %arg9[%c0_14, %c0_15] : memref<1x64xf32, #tpu.memory_space<vmem>>, vector<1x64xf32>
      tpu.vector_store %arg9[%c0_14, %c0_15], %19 {strides = array<i32>} : memref<1x64xf32, #tpu.memory_space<vmem>>, vector<1x64xf32>,
      %cst_16 = arith.constant 0.000000e+00 : f32
      %21 = vector.broadcast %cst_16 : f32 to vector<1x64xf32>
      %c0_17 = arith.constant 0 : index
      %c0_18 = arith.constant 0 : index
      %22 = vector.load %arg10[%c0_17, %c0_18] : memref<1x64xf32, #tpu.memory_space<vmem>>, vector<1x64xf32>
      tpu.vector_store %arg10[%c0_17, %c0_18], %21 {strides = array<i32>} : memref<1x64xf32, #tpu.memory_space<vmem>>, vector<1x64xf32>,
    } else {
    }
    %c0 = arith.constant 0 : index
    %c0_1 = arith.constant 0 : index
    %c0_2 = arith.constant 0 : index
    %3 = vector.load %arg2[%c0, %c0_1, %c0_2] : memref<1x128x64xf32, #tpu.memory_space<vmem>>, vector<1x128x64xf32>
    %4 = vector.shape_cast %3 : vector<1x128x64xf32> to vector<128x64xf32>
    %c0_3 = arith.constant 0 : index
    %c0_4 = arith.constant 0 : index
    %5 = vector.load %arg9[%c0_3, %c0_4] : memref<1x64xf32, #tpu.memory_space<vmem>>, vector<1x64xf32>
    %cst = arith.constant dense<0.000000e+00> : vector<64xf32>
    %6 = vector.multi_reduction <add>, %4, %cst [0] : vector<128x64xf32> to vector<64xf32>
    %7 = vector.shape_cast %6 : vector<64xf32> to vector<1x64xf32>
    %8 = arith.addf %5, %7 : vector<1x64xf32>
    %c0_5 = arith.constant 0 : index
    %c0_6 = arith.constant 0 : index
    %9 = vector.load %arg9[%c0_5, %c0_6] : memref<1x64xf32, #tpu.memory_space<vmem>>, vector<1x64xf32>
    tpu.vector_store %arg9[%c0_5, %c0_6], %8 {strides = array<i32>} : memref<1x64xf32, #tpu.memory_space<vmem>>, vector<1x64xf32>,
    %c0_7 = arith.constant 0 : index
    %c0_8 = arith.constant 0 : index
    %10 = vector.load %arg10[%c0_7, %c0_8] : memref<1x64xf32, #tpu.memory_space<vmem>>, vector<1x64xf32>
    %11 = arith.mulf %4, %4 : vector<128x64xf32>
    %cst_9 = arith.constant dense<0.000000e+00> : vector<64xf32>
    %12 = vector.multi_reduction <add>, %11, %cst_9 [0] : vector<128x64xf32> to vector<64xf32>
    %13 = vector.shape_cast %12 : vector<64xf32> to vector<1x64xf32>
    %14 = arith.addf %10, %13 : vector<1x64xf32>
    %c0_10 = arith.constant 0 : index
    %c0_11 = arith.constant 0 : index
    %15 = vector.load %arg10[%c0_10, %c0_11] : memref<1x64xf32, #tpu.memory_space<vmem>>, vector<1x64xf32>
    tpu.vector_store %arg10[%c0_10, %c0_11], %14 {strides = array<i32>} : memref<1x64xf32, #tpu.memory_space<vmem>>, vector<1x64xf32>,
    %c1_i32 = arith.constant 1 : i32
    %16 = arith.cmpi eq, %arg1, %c1_i32 : i32
    %17 = arith.extui %16 : i1 to i32
    %c0_i32_12 = arith.constant 0 : i32
    %18 = arith.cmpi ne, %17, %c0_i32_12 : i32
    scf.if %18 {
      %c0_13 = arith.constant 0 : index
      %c0_14 = arith.constant 0 : index
      %19 = vector.load %arg9[%c0_13, %c0_14] : memref<1x64xf32, #tpu.memory_space<vmem>>, vector<1x64xf32>
      %c0_15 = arith.constant 0 : index
      %c0_16 = arith.constant 0 : index
      %20 = vector.load %arg5[%c0_15, %c0_16] : memref<64x32xf32, #tpu.memory_space<vmem>>, vector<64x32xf32>
      %cst_17 = arith.constant dense<0.000000e+00> : vector<1x32xf32>
      %21 = tpu.matmul %19, %20, %cst_17 {dimension_numbers = #tpu.dot_dimension_numbers<[1], [0], [0], [1], [0, 0, 1, 1], [], []>} : vector<1x64xf32>, vector<64x32xf32>, vector<1x32xf32> -> vector<1x32xf32>
      %c0_18 = arith.constant 0 : index
      %c0_19 = arith.constant 0 : index
      %22 = vector.load %arg10[%c0_18, %c0_19] : memref<1x64xf32, #tpu.memory_space<vmem>>, vector<1x64xf32>
      %c0_20 = arith.constant 0 : index
      %c0_21 = arith.constant 0 : index
      %23 = vector.load %arg5[%c0_20, %c0_21] : memref<64x32xf32, #tpu.memory_space<vmem>>, vector<64x32xf32>
      %cst_22 = arith.constant dense<0.000000e+00> : vector<1x32xf32>
      %24 = tpu.matmul %22, %23, %cst_22 {dimension_numbers = #tpu.dot_dimension_numbers<[1], [0], [0], [1], [0, 0, 1, 1], [], []>} : vector<1x64xf32>, vector<64x32xf32>, vector<1x32xf32> -> vector<1x32xf32>
      %cst_23 = arith.constant 0.001953125 : f32
      %25 = vector.broadcast %cst_23 : f32 to vector<1x32xf32>
      %26 = arith.mulf %21, %25 : vector<1x32xf32>
      %cst_24 = arith.constant 0.001953125 : f32
      %27 = vector.broadcast %cst_24 : f32 to vector<1x32xf32>
      %28 = arith.mulf %24, %27 : vector<1x32xf32>
      %29 = arith.mulf %26, %26 : vector<1x32xf32>
      %30 = arith.subf %28, %29 : vector<1x32xf32>
      %cst_25 = arith.constant 9.99999997E-7 : f32
      %31 = vector.broadcast %cst_25 : f32 to vector<1x32xf32>
      %32 = arith.addf %30, %31 : vector<1x32xf32>
      %33 = math.rsqrt %32 : vector<1x32xf32>
      %c0_26 = arith.constant 0 : index
      %c0_27 = arith.constant 0 : index
      %34 = vector.load %arg6[%c0_26, %c0_27] : memref<32x64xf32, #tpu.memory_space<vmem>>, vector<32x64xf32>
      %cst_28 = arith.constant dense<0.000000e+00> : vector<1x64xf32>
      %35 = tpu.matmul %26, %34, %cst_28 {dimension_numbers = #tpu.dot_dimension_numbers<[1], [0], [0], [1], [0, 0, 1, 1], [], []>} : vector<1x32xf32>, vector<32x64xf32>, vector<1x64xf32> -> vector<1x64xf32>
      %c0_29 = arith.constant 0 : index
      %c0_30 = arith.constant 0 : index
      %36 = vector.load %arg6[%c0_29, %c0_30] : memref<32x64xf32, #tpu.memory_space<vmem>>, vector<32x64xf32>
      %cst_31 = arith.constant dense<0.000000e+00> : vector<1x64xf32>
      %37 = tpu.matmul %33, %36, %cst_31 {dimension_numbers = #tpu.dot_dimension_numbers<[1], [0], [0], [1], [0, 0, 1, 1], [], []>} : vector<1x32xf32>, vector<32x64xf32>, vector<1x64xf32> -> vector<1x64xf32>
      %c0_32 = arith.constant 0 : index
      %c0_33 = arith.constant 0 : index
      %38 = vector.load %arg3[%c0_32, %c0_33] : memref<1x64xf32, #tpu.memory_space<vmem>>, vector<1x64xf32>
      %39 = arith.mulf %37, %38 : vector<1x64xf32>
      %c0_34 = arith.constant 0 : index
      %c0_35 = arith.constant 0 : index
      %c0_36 = arith.constant 0 : index
      %40 = vector.load %arg7[%c0_34, %c0_35, %c0_36] : memref<1x1x64xf32, #tpu.memory_space<vmem>>, vector<1x1x64xf32>
      %41 = vector.shape_cast %40 : vector<1x1x64xf32> to vector<1x64xf32>
      %42 = vector.shape_cast %39 : vector<1x64xf32> to vector<1x1x64xf32>
      tpu.vector_store %arg7[%c0_34, %c0_35, %c0_36], %42 {strides = array<i32>} : memref<1x1x64xf32, #tpu.memory_space<vmem>>, vector<1x1x64xf32>,
      %c0_37 = arith.constant 0 : index
      %c0_38 = arith.constant 0 : index
      %43 = vector.load %arg4[%c0_37, %c0_38] : memref<1x64xf32, #tpu.memory_space<vmem>>, vector<1x64xf32>
      %44 = arith.mulf %35, %39 : vector<1x64xf32>
      %45 = arith.subf %43, %44 : vector<1x64xf32>
      %c0_39 = arith.constant 0 : index
      %c0_40 = arith.constant 0 : index
      %c0_41 = arith.constant 0 : index
      %46 = vector.load %arg8[%c0_39, %c0_40, %c0_41] : memref<1x1x64xf32, #tpu.memory_space<vmem>>, vector<1x1x64xf32>
      %47 = vector.shape_cast %46 : vector<1x1x64xf32> to vector<1x64xf32>
      %48 = vector.shape_cast %45 : vector<1x64xf32> to vector<1x1x64xf32>
      tpu.vector_store %arg8[%c0_39, %c0_40, %c0_41], %48 {strides = array<i32>} : memref<1x1x64xf32, #tpu.memory_space<vmem>>, vector<1x1x64xf32>,
    } else {
    }
    return
  }
  func.func @transform_0(%arg0: i32, %arg1: i32) -> (i32, i32, i32) {
    %c0_i32 = arith.constant 0 : i32
    %c0_i32_0 = arith.constant 0 : i32
    return %arg0, %arg1, %c0_i32 : i32, i32, i32
  }
  func.func @transform_1(%arg0: i32, %arg1: i32) -> (i32, i32) {
    %c0_i32 = arith.constant 0 : i32
    %c0_i32_0 = arith.constant 0 : i32
    %c0_i32_1 = arith.constant 0 : i32
    return %c0_i32, %c0_i32_0 : i32, i32
  }
  func.func @transform_2(%arg0: i32, %arg1: i32) -> (i32, i32) {
    %c0_i32 = arith.constant 0 : i32
    %c0_i32_0 = arith.constant 0 : i32
    %c0_i32_1 = arith.constant 0 : i32
    return %c0_i32, %c0_i32_0 : i32, i32
  }
  func.func @transform_3(%arg0: i32, %arg1: i32) -> (i32, i32) {
    %c0_i32 = arith.constant 0 : i32
    %c0_i32_0 = arith.constant 0 : i32
    %c0_i32_1 = arith.constant 0 : i32
    return %c0_i32, %c0_i32_0 : i32, i32
  }
  func.func @transform_4(%arg0: i32, %arg1: i32) -> (i32, i32) {
    %c0_i32 = arith.constant 0 : i32
    %c0_i32_0 = arith.constant 0 : i32
    %c0_i32_1 = arith.constant 0 : i32
    return %c0_i32, %c0_i32_0 : i32, i32
  }
  func.func @transform_5(%arg0: i32, %arg1: i32) -> (i32, i32, i32) {
    %c0_i32 = arith.constant 0 : i32
    %c0_i32_0 = arith.constant 0 : i32
    %c0_i32_1 = arith.constant 0 : i32
    return %arg0, %c0_i32, %c0_i32_0 : i32, i32, i32
  }
  func.func @transform_6(%arg0: i32, %arg1: i32) -> (i32, i32, i32) {
    %c0_i32 = arith.constant 0 : i32
    %c0_i32_0 = arith.constant 0 : i32
    %c0_i32_1 = arith.constant 0 : i32
    return %arg0, %c0_i32, %c0_i32_0 : i32, i32, i32
  }
}

</mosaic_0001>

<bundles_post_ra>
// kernel: tpu_custom_call.1
= control target key start
LH: loop header
LB: loop body
LE: loop exit
PB: predicated region body
PF: predicated region fallthrough
CT: control target
= control target key end

     0   :  { %s1178_s0 = inlined_call_operand.vmem [shape: f32[2,256,64], index: 0, kind: input, shape index: {}]   ;;  %s1179_s1 = inlined_call_operand.vmem [shape: f32[1,64], index: 1, kind: input, shape index: {}]   ;;  %s1180_s2 = inlined_call_operand.vmem [shape: f32[1,64], index: 2, kind: input, shape index: {}]   ;;  %s1181_s3 = inlined_call_operand.vmem [shape: f32[64,32], index: 3, kind: input, shape index: {}]   ;;  %s1182_s4 = inlined_call_operand.vmem [shape: f32[32,64], index: 4, kind: input, shape index: {}]   ;;  %s1183_s5 = inlined_call_operand.hbm [shape: f32[2,1,64], index: 5, kind: output, shape index: {0}]   ;;  %s1184_s6 = inlined_call_operand.hbm [shape: f32[2,1,64], index: 6, kind: output, shape index: {1}]  }
   0x1   :  { %1185 = sst [smem:[#allocation10_spill]] %s1178_s0 }
   0x2   :  { %1186 = sst [smem:[#allocation11_spill]] %s1179_s1 }
   0x3   :  { %1187 = sst [smem:[#allocation12_spill]] %s1180_s2 }
   0x4   :  { %12 = vsyncpa [#allocation5], 0 }
   0x5   :  { %14 = vsyncpa [#allocation5 + $0x1], 0 }
   0x6   :  { %15 = vsyncpa [#allocation7], 0 }
   0x7   :  { %17 = vsyncpa [#allocation7 + $0x1], 0  ;;  %s930_s21 = smov 0   ;;  %s932_s22 = smov 0  }
   0x8   :  { %s934_s23 = smov 0   ;;  %s936_s24 = smov 0  }
   0x9   :  { %s938_s25 = smov 0   ;;  %s940_s26 = smov 0  }
   0xa   :  { %s942_s27 = smov 0   ;;  %s944_s28 = smov 0  }
   0xb LB: > { %s671_s29 = sadd.s32 4294967295, %s892_s28   ;;  %s672_s30 = sadd.s32 4294967294, %s892_s28   ;;  %s892_s28 = sphi %s944_s28, %s23_s28   ;;  %s888_s27 = sphi %s942_s27, %s1201_s27   ;;  %s884_s26 = sphi %s940_s26, %s1200_s26   ;;  %s880_s25 = sphi %s938_s25, %s1199_s25   ;;  %s876_s24 = sphi %s936_s24, %s1198_s24   ;;  %s872_s23 = sphi %s934_s23, %s1197_s23   ;;  %s868_s22 = sphi %s932_s22, %s1196_s22   ;;  %s864_s21 = sphi %s930_s21, %s1195_s21  }
   0xc   : > { %s32_s7 = sadd.s32 1, %s884_s26  ;;  %s35_s8 = sadd.s32 1, %s888_s27 }
   0xd   : > { %p33_p0 = scmp.ge.s32.totalorder %s32_s7, 2  ;;  %p164_p1 = scmp.ne.s32.totalorder %s872_s23, %s868_s22 }
   0xe   : > { %p165_p2 = scmp.eq.s32.totalorder %s671_s29, 3  ;;  %p170_p4 = scmp.ne.s32.totalorder %s868_s22, %s864_s21 }
   0xf   : > { %s1203_s7 = smov (%p33_p0, %s32_s7), 0  ;;  %s1205_s8 = smov (!%p33_p0, %s35_s8), %s888_s27 }
  0x10   : > { %p979_p3 = por %p165_p2, %p164_p1  ;;  %p37_p5 = scmp.ge.s32.totalorder %s1205_s8, 2 }
  0x11   : > { %p171_p6 = scmp.eq.s32.totalorder %s672_s30, 3  ;;  %p675_p7 = scmp.ge.s32.totalorder %s892_s28, 1 }
  0x12   : > { %p240_p8 = scmp.lt.s32.totalorder %s892_s28, 5  ;;  %s1207_s8 = smov (%p37_p5, %s1205_s8), 0 }
  0x13   : > { %p989_p9 = por %p171_p6, %p170_p4  ;;  %s151_s11 = ssub.s32 %s888_s27, %s1207_s8 }
  0x14   : > { %p241_p10 = pnand %p675_p7, %p240_p8  ;;  %s154_s12 = sadd.s32 1, %s872_s23 }
  0x15   : > { %p152_p11 = scmp.eq.s32.totalorder %s151_s11, 0  ;;  %s1000_s14 = sand.u32 (!%p241_p10), 1, %s868_s22  }
  0x16   : > { %244 = sbr.rel (%p241_p10) target bundleno = 421 (0x1a5), region = 40  ;;  %s676_s15 = sshll.u32 (!%p241_p10), %s876_s24, 4 }
  0x17   : > { %s997_s13 = scalar_select %p152_p11, %s872_s23, %s154_s12  }
  0x18   : > { %p278_p12 = scmp.lt.s32.totalorder (!%p241_p10), %s880_s25, 1  ;;  %p280_p13 = scmp.lt.s32.totalorder (!%p241_p10), %s676_s15, 31 }
  0x19   : > { %s1190_s0 = sld [smem:[#allocation10_spill]] (!%p241_p10)  ;;  %s270_s11 = scalar_lea.vmem (!%p241_p10), [#allocation4], %s1000_s14 }
  0x1a   : > { %p679_p0 = scmp.ne.s32.totalorder (!%p241_p10), %s876_s24, 0 }
  0x1b   : > { %s279_s16 = scalar_select %p278_p12, %s880_s25, 1 }
  0x1c   : > { %s1209_s15 = smov (!%p280_p13, %s676_s15), 31  ;;  %290 = sbr.rel (%p679_p0) target bundleno = 36 (0x24), region = 44 }
  0x1d   : > { %s677_s17 = sshll.u32 %s279_s16, 5 }
  0x1e   : > { %s283_s18 = sadd.s32 %s677_s17, %s1209_s15 }
  0x1f   : > { %s678_s19 = sshll.u32 %s283_s18, 3 }
  0x20   : > { %s1008_s30 = scalar_lea.vmem %s1190_s0, %s678_s19 }
  0x21   : > { %vm291_vm0 = vcmask 516096   ;;  %v894_v0 = vmov 0.0  }
  0x22   : > { %292 = vst.msk [vmem:[#allocation2] sm:$0x1] %vm291_vm0, %v894_v0 }
  0x23   : > { %293 = vst.msk [vmem:[#allocation3] sm:$0x1] %vm291_vm0, %v894_v0 }
  0x24 PF: > { %v294_v1 = vld [vmem:[%s1008_s30] sm:$0xff]  ;;  %v295_v2 = vld [vmem:[%s1008_s30 + $0x8] sm:$0xff]  ;;  %v296_v3 = vld [vmem:[%s1008_s30 + $0x10] sm:$0xff]  ;;  %vm311_vm1 = vcmask 523264   ;;  %vm350_vm2 = vcmask 516096   ;;  %p680_p1 = scmp.ne.s32.totalorder %s876_s24, 1 }
  0x25   : > { %v312_v4 = vsel %vm311_vm1, %v294_v1, 0.0  ;;  %v313_v5 = vsel %vm311_vm1, %v295_v2, 0.0  ;;  %v315_v6 = vsel %vm311_vm1, %v296_v3, 0.0  ;;  %v297_v7 = vld [vmem:[%s1008_s30 + $0x18] sm:$0xff]  ;;  %v298_v10 = vld [vmem:[%s1008_s30 + $0x20] sm:$0xff]  ;;  %v299_v13 = vld [vmem:[%s1008_s30 + $0x28] sm:$0xff]  ;;  %v353_v15 = vmul.f32 %v294_v1, %v294_v1 }
  0x26   : > { %v314_v8 = vadd.f32 %v313_v5, %v312_v4  ;;  %v317_v9 = vsel %vm311_vm1, %v297_v7, 0.0  ;;  %v319_v12 = vsel %vm311_vm1, %v298_v10, 0.0  ;;  %v354_v16 = vmul.f32 %v295_v2, %v295_v2  ;;  %v300_v19 = vld [vmem:[%s1008_s30 + $0x30] sm:$0xff]  ;;  %v301_v24 = vld [vmem:[%s1008_s30 + $0x38] sm:$0xff]  ;;  %v302_v31 = vld [vmem:[%s1008_s30 + $0x40] sm:$0xff]  ;;  %s1191_s1 = sld [smem:[#allocation11_spill]] (!%p680_p1) }
  0x27   : > { %v355_v17 = vmul.f32 %v296_v3, %v296_v3  ;;  %v321_v18 = vsel %vm311_vm1, %v299_v13, 0.0  ;;  %v356_v21 = vmul.f32 %v297_v7, %v297_v7  ;;  %v323_v22 = vsel %vm311_vm1, %v300_v19, 0.0  ;;  %v303_v37 = vld [vmem:[%s1008_s30 + $0x48] sm:$0xff]  ;;  %v304_v43 = vld [vmem:[%s1008_s30 + $0x50] sm:$0xff]  ;;  %v305_v49 = vld [vmem:[%s1008_s30 + $0x58] sm:$0xff]  ;;  %s1192_s2 = sld [smem:[#allocation12_spill]] (!%p680_p1) }
  0x28   : > { %v316_v11 = vadd.f32 %v315_v6, %v314_v8  ;;  %v357_v23 = vmul.f32 %v298_v10, %v298_v10  ;;  %v369_v26 = vsel %vm311_vm1, %v353_v15, 0.0  ;;  %v370_v27 = vsel %vm311_vm1, %v354_v16, 0.0  ;;  %v306_v55 = vld [vmem:[%s1008_s30 + $0x60] sm:$0xff]  ;;  %v307_v61 = vld [vmem:[%s1008_s30 + $0x68] sm:$0xff]  ;;  %v308_v3 = vld [vmem:[%s1008_s30 + $0x70] sm:$0xff] }
  0x29   : > { %v372_v28 = vsel %vm311_vm1, %v355_v17, 0.0  ;;  %v325_v29 = vsel %vm311_vm1, %v301_v24, 0.0  ;;  %v371_v30 = vadd.f32 %v370_v27, %v369_v26  ;;  %v358_v33 = vmul.f32 %v299_v13, %v299_v13 }
  0x2a   : > { %v318_v14 = vadd.f32 %v317_v9, %v316_v11  ;;  %v374_v34 = vsel %vm311_vm1, %v356_v21, 0.0  ;;  %v327_v35 = vsel %vm311_vm1, %v302_v31, 0.0  ;;  %v359_v39 = vmul.f32 %v300_v19, %v300_v19  ;;  %v309_v9 = vld [vmem:[%s1008_s30 + $0x78] sm:$0xff]  ;;  %s1193_s30 = scalar_lea.vmem (!%p680_p1), [#allocation6], %s1000_s14 }
  0x2b   : > { %v373_v36 = vadd.f32 %v372_v28, %v371_v30  ;;  %v376_v40 = vsel %vm311_vm1, %v357_v23, 0.0  ;;  %v329_v41 = vsel %vm311_vm1, %v303_v37, 0.0  ;;  %v360_v45 = vmul.f32 %v301_v24, %v301_v24 }
  0x2c   : > { %v320_v20 = vadd.f32 %v319_v12, %v318_v14  ;;  %v378_v46 = vsel %vm311_vm1, %v358_v33, 0.0  ;;  %v331_v47 = vsel %vm311_vm1, %v304_v43, 0.0  ;;  %v361_v51 = vmul.f32 %v302_v31, %v302_v31 }
  0x2d   : > { %v375_v42 = vadd.f32 %v374_v34, %v373_v36  ;;  %v380_v52 = vsel %vm311_vm1, %v359_v39, 0.0  ;;  %v333_v53 = vsel %vm311_vm1, %v305_v49, 0.0  ;;  %v362_v57 = vmul.f32 %v303_v37, %v303_v37  ;;  %v310_v36 = vld [vmem:[#allocation2] sm:$0x1] }
  0x2e   : > { %v322_v25 = vadd.f32 %v321_v18, %v320_v20  ;;  %v382_v58 = vsel %vm311_vm1, %v360_v45, 0.0  ;;  %v335_v59 = vsel %vm311_vm1, %v306_v55, 0.0  ;;  %v363_v63 = vmul.f32 %v304_v43, %v304_v43 }
  0x2f   : > { %v377_v48 = vadd.f32 %v376_v40, %v375_v42  ;;  %v384_v0 = vsel %vm311_vm1, %v361_v51, 0.0  ;;  %v337_v1 = vsel %vm311_vm1, %v307_v61, 0.0  ;;  %v364_v5 = vmul.f32 %v305_v49, %v305_v49 }
  0x30   : > { %v324_v32 = vadd.f32 %v323_v22, %v322_v25  ;;  %v386_v6 = vsel %vm311_vm1, %v362_v57, 0.0  ;;  %v339_v7 = vsel %vm311_vm1, %v308_v3, 0.0  ;;  %v365_v11 = vmul.f32 %v306_v55, %v306_v55 }
  0x31   : > { %v379_v54 = vadd.f32 %v378_v46, %v377_v48  ;;  %v388_v12 = vsel %vm311_vm1, %v363_v63, 0.0  ;;  %v341_v13 = vsel %vm311_vm1, %v309_v9, 0.0  ;;  %v366_v16 = vmul.f32 %v307_v61, %v307_v61 }
  0x32   : > { %v326_v38 = vadd.f32 %v325_v29, %v324_v32  ;;  %v390_v17 = vsel %vm311_vm1, %v364_v5, 0.0  ;;  %v367_v20 = vmul.f32 %v308_v3, %v308_v3  ;;  %v392_v21 = vsel %vm311_vm1, %v365_v11, 0.0 }
  0x33   : > { %v381_v60 = vadd.f32 %v380_v52, %v379_v54  ;;  %v368_v24 = vmul.f32 %v309_v9, %v309_v9  ;;  %v394_v25 = vsel %vm311_vm1, %v366_v16, 0.0 }
  0x34   : > { %v328_v44 = vadd.f32 %v327_v35, %v326_v38  ;;  %v396_v28 = vsel %vm311_vm1, %v367_v20, 0.0 }
  0x35   : > { %v383_v2 = vadd.f32 %v382_v58, %v381_v60  ;;  %v398_v31 = vsel %vm311_vm1, %v368_v24, 0.0 }
  0x36   : > { %v330_v50 = vadd.f32 %v329_v41, %v328_v44  ;;  %v352_v44 = vld [vmem:[#allocation3] sm:$0x1] }
  0x37   : > { %v385_v8 = vadd.f32 %v384_v0, %v383_v2 }
  0x38   : > { %v332_v56 = vadd.f32 %v331_v47, %v330_v50 }
  0x39   : > { %v387_v14 = vadd.f32 %v386_v6, %v385_v8 }
  0x3a   : > { %v334_v62 = vadd.f32 %v333_v53, %v332_v56 }
  0x3b   : > { %v389_v18 = vadd.f32 %v388_v12, %v387_v14 }
  0x3c   : > { %v336_v4 = vadd.f32 %v335_v59, %v334_v62 }
  0x3d   : > { %v391_v22 = vadd.f32 %v390_v17, %v389_v18 }
  0x3e   : > { %v338_v10 = vadd.f32 %v337_v1, %v336_v4 }
  0x3f   : > { %v393_v26 = vadd.f32 %v392_v21, %v391_v22 }
  0x40   : > { %v340_v15 = vadd.f32 %v339_v7, %v338_v10 }
  0x41   : > { %v395_v29 = vadd.f32 %v394_v25, %v393_v26 }
  0x42   : > { %v342_v19 = vadd.f32 %v341_v13, %v340_v15 }
  0x43   : > { %v397_v32 = vadd.f32 %v396_v28, %v395_v29 }
  0x44   : > { %v343_v23 = vrot.slane %v342_v19, 4 }
  0x45   : > { %v399_v34 = vadd.f32 %v398_v31, %v397_v32 }
  0x46   : > { %v344_v27 = vadd.f32 %v343_v23, %v342_v19 }
  0x47   : > { %v400_v37 = vrot.slane %v399_v34, 4 }
  0x48   : > { %v345_v30 = vrot.slane %v344_v27, 2 }
  0x49   : > { %v401_v39 = vadd.f32 %v400_v37, %v399_v34 }
  0x4a   : > { %v346_v33 = vadd.f32 %v345_v30, %v344_v27 }
  0x4b   : > { %v402_v41 = vrot.slane %v401_v39, 2 }
  0x4c   : > { %v347_v35 = vrot.slane %v346_v33, 1 }
  0x4d   : > { %v403_v42 = vadd.f32 %v402_v41, %v401_v39 }
  0x4e   : > { %v348_v38 = vadd.f32 %v347_v35, %v346_v33 }
  0x4f   : > { %v404_v43 = vrot.slane %v403_v42, 1 }
  0x50   : > { %v349_v40 = vadd.f32 %v348_v38, %v310_v36 }
  0x51   : > { %v405_v45 = vadd.f32 %v404_v43, %v403_v42  ;;  %411 = sbr.rel (%p680_p1) target bundleno = 393 (0x189), region = 48 }
  0x52   : > { %351 = vst.msk [vmem:[#allocation2] sm:$0x1] %vm350_vm2, %v349_v40 }
  0x53   : > { %v406_v46 = vadd.f32 %v405_v45, %v352_v44 }
  0x55   : > { %407 = vst.msk [vmem:[#allocation3] sm:$0x1] %vm350_vm2, %v406_v46 }
  0x56   : > { %v420_v47 = vld [vmem:[%s1181_s3 + $0x38] sm:$0xff]  ;;  %v419_v48 = vld [vmem:[%s1181_s3 + $0x30] sm:$0xff]  ;;  %v418_v49 = vld [vmem:[%s1181_s3 + $0x28] sm:$0xff]  ;;  %vm487_vm3 = vcmask 261120  }
  0x57   : > { %432 = vmatpush.msra.mxu0 %v420_v47  ;;  %456 = vmatpush.msra.mxu1 %v420_v47  ;;  %v486_v50 = vld [vmem:[%s1182_s4 + $0x18] sm:$0xff]  ;;  %v485_v51 = vld [vmem:[%s1182_s4 + $0x10] sm:$0xff]  ;;  %v417_v52 = vld [vmem:[%s1181_s3 + $0x20] sm:$0xff] }
  0x58   : > { %503 = vmatpush.msra.mxu2 %v486_v50  ;;  %526 = vmatpush.msra.mxu3 %v486_v50  ;;  %v416_v53 = vld [vmem:[%s1181_s3 + $0x18] sm:$0xff]  ;;  %v415_v54 = vld [vmem:[%s1181_s3 + $0x10] sm:$0xff]  ;;  %v414_v55 = vld [vmem:[%s1181_s3 + $0x8] sm:$0xff] }
  0x59   : > { %433 = vmatpush.msra.mxu0 %v419_v48  ;;  %457 = vmatpush.msra.mxu1 %v419_v48  ;;  %v413_v56 = vld [vmem:[%s1181_s3] sm:$0xff]  ;;  %v484_v59 = vld [vmem:[%s1182_s4 + $0x8] sm:$0xff] }
  0x5a   : > { %504 = vmatpush.msra.mxu2 %v485_v51  ;;  %527 = vmatpush.msra.mxu3 %v485_v51  ;;  %v412_v57 = vld [vmem:[#allocation2] sm:$0x1] }
  0x5b   : > { %434 = vmatpush.msra.mxu0 %v418_v49  ;;  %458 = vmatpush.msra.mxu1 %v418_v49  ;;  %v483_v60 = vld [vmem:[%s1182_s4] sm:$0xff] }
  0x5c   : > { %v444_v58 = vld [vmem:[#allocation3] sm:$0x1]  ;;  %505 = vmatpush.msra.mxu2 %v484_v59  ;;  %528 = vmatpush.msra.mxu3 %v484_v59  ;;  %v534_v11 = vld [vmem:[%s1191_s1] sm:$0x1] }
  0x5d   : > { %435 = vmatpush.msra.mxu0 %v417_v52  ;;  %459 = vmatpush.msra.mxu1 %v417_v52  ;;  %v537_v15 = vld [vmem:[%s1192_s2] sm:$0x1] }
  0x5e   : > { %506 = vmatpush.msra.mxu2 %v483_v60  ;;  %529 = vmatpush.msra.mxu3 %v483_v60 }
  0x5f   : > { %436 = vmatpush.msra.mxu0 %v416_v53  ;;  %460 = vmatpush.msra.mxu1 %v416_v53 }
  0x61   : > { %437 = vmatpush.msra.mxu0 %v415_v54  ;;  %461 = vmatpush.msra.mxu1 %v415_v54 }
  0x63   : > { %438 = vmatpush.msra.mxu0 %v414_v55  ;;  %462 = vmatpush.msra.mxu1 %v414_v55 }
  0x65   : > { %439 = vmatpush.msra.mxu0 %v413_v56  ;;  %463 = vmatpush.msra.mxu1 %v413_v56 }
  0x66   : > { %681 = vmatmul.msk.f32.vlgmr.msra.gmra.mxu0 %vm311_vm1, %v412_v57  ;;  %682 = vmatmul.msk.f32.vlgmr.msra.gmra.mxu1 %vm311_vm1, %v444_v58 }
  0xe3   : > { %v441_v61 = vpop.f32.mrf.mxu0  ;;  %v465_v62 = vpop.f32.mrf.mxu1 }
  0xe4   : > { %v468_v63 = vmul.f32 0.001953125, %v441_v61  ;;  %v469_v0 = vmul.f32 0.001953125, %v465_v62 }
  0xe6   : > { %v470_v1 = vmul.f32 %v468_v63, %v468_v63  ;;  %683 = vmatmul.msk.f32.vlgmr.msra.gmra.mxu2 %vm487_vm3, %v468_v63 }
  0xe8   : > { %v471_v2 = vsub.f32 %v469_v0, %v470_v1 }
  0xea   : > { %v472_v3 = vadd.f32 1e-06, %v471_v2 }
  0xec   : > { %764 = vrsqrt.f32 %v472_v3  ;;  %vm479_vm5 = vweird.f32 %v472_v3 }
  0xf2   : > { %v765_v4 = vpop.eup %764 }
  0xf3   : > { %v474_v5 = vmul.f32 %v765_v4, %v472_v3  ;;  %vm480_vm4 = vweird.f32 %v765_v4 }
  0xf4   : > { %vm481_vm6 = vmor %vm479_vm5, %vm480_vm4 }
  0xf5   : > { %v475_v6 = vmul.f32 %v765_v4, %v474_v5 }
  0xf7   : > { %v476_v7 = vmul.f32 0.5, %v475_v6 }
  0xf9   : > { %v477_v8 = vsub.f32 1.5, %v476_v7 }
  0xfb   : > { %v478_v9 = vmul.f32 %v765_v4, %v477_v8 }
  0xfd   : > { %v482_v10 = vsel %vm481_vm6, %v765_v4, %v478_v9 }
  0xfe   : > { %684 = vmatmul.msk.f32.vlgmr.msra.gmra.mxu3 %vm487_vm3, %v482_v10 }
 0x169   : > { %v508_v14 = vpop.f32.mrf.mxu2 }
 0x181   : > { %v531_v12 = vpop.f32.mrf.mxu3 }
 0x182   : > { %v535_v13 = vmul.f32 %v534_v11, %v531_v12 }
 0x184   : > { %536 = vst.msk [vmem:[%s270_s11] sm:$0x1] %vm350_vm2, %v535_v13  ;;  %v538_v16 = vmul.f32 %v535_v13, %v508_v14 }
 0x186   : > { %v539_v17 = vsub.f32 %v537_v15, %v538_v16 }
 0x188   : > { %540 = vst.msk [vmem:[%s1193_s30] sm:$0x1] %vm350_vm2, %v539_v17 }
 0x189 PF: > { %s554_s16 = scalar_lea.hbm %s1183_s5, %s880_s25  ;;  %s556_s17 = sshll.u32 %s270_s11, 4  ;;  %s557_s17 = int_to_ptr.vmem [resolvable:$true] %s556_s17 }
 0x18a   : > { %s558_s18 = sshll.u32 %s554_s16, 4  ;;  %s542_s19 = scalar_lea.sflag [#allocation5], %s1000_s14  ;;  %s559_s18 = int_to_ptr.hbm [resolvable:$true] %s558_s18 }
 0x18b   : > { %s780_s20 = sshra.s32 %s559_s18, 4  ;;  %s786_s24 = scalar_lea.hbm %s1183_s5, 2  ;;  %s781_s20 = int_to_ptr.hbm [resolvable:$true] %s780_s20 }
 0x18c   : > { %s782_s12 = scalar_lea.hbm %s781_s20, 1  ;;  %p787_p6 = scmp.lt.s32.totalorder %s781_s20, %s1183_s5 }
 0x18d   : > { %p783_p2 = scmp.ne.s32.totalorder %s781_s20, %s782_s12  ;;  %p788_p7 = scmp.lt.s32.totalorder %s786_s24, %s782_s12 }
 0x18f   : > { %p784_p4 = pnand %p783_p2, %p979_p3  ;;  %p789_p8 = por %p788_p7, %p787_p6 }
 0x191   : > { %p785_p5 = pneg %p784_p4 }
 0x193   : > { %p790_p10 = pnand %p789_p8, %p785_p5 }
 0x195   : > { %793 = shalt.err (!%p790_p10)
}
 0x196   : > { %687 = dma.vmem_to_hbm [thread:$0]  (%p979_p3), %s557_s17, 16, %s559_s18, %s542_s19  }
 0x197   : > { %s567_s29 = scalar_lea.hbm %s1184_s6, %s880_s25  ;;  %s1194_s30 = scalar_lea.vmem [#allocation6], %s1000_s14 }
 0x198   : > { %s569_s1 = sshll.u32 %s1194_s30, 4  ;;  %s571_s2 = sshll.u32 %s567_s29, 4  ;;  %s570_s1 = int_to_ptr.vmem [resolvable:$true] %s569_s1  ;;  %s572_s2 = int_to_ptr.hbm [resolvable:$true] %s571_s2 }
 0x199   : > { %s546_s0 = scalar_lea.sflag [#allocation7], %s1000_s14  ;;  %s808_s20 = sshra.s32 %s572_s2, 4  ;;  %s809_s20 = int_to_ptr.hbm [resolvable:$true] %s808_s20 }
 0x19a   : > { %s810_s12 = scalar_lea.hbm %s809_s20, 1  ;;  %s814_s17 = scalar_lea.hbm %s1184_s6, 2 }
 0x19b   : > { %p811_p11 = scmp.ne.s32.totalorder %s809_s20, %s810_s12  ;;  %p815_p0 = scmp.lt.s32.totalorder %s809_s20, %s1184_s6 }
 0x19c   : > { %p816_p1 = scmp.lt.s32.totalorder %s814_s17, %s810_s12 }
 0x19d   : > { %p812_p12 = pnand %p811_p11, %p979_p3 }
 0x19e   : > { %p817_p2 = por %p816_p1, %p815_p0 }
 0x19f   : > { %p813_p13 = pneg %p812_p12 }
 0x1a1   : > { %p818_p4 = pnand %p817_p2, %p813_p13 }
 0x1a3   : > { %821 = shalt.err (!%p818_p4)
}
 0x1a4   : > { %688 = dma.vmem_to_hbm [thread:$0]  (%p979_p3), %s570_s1, 16, %s572_s2, %s546_s0  }
 0x1a5 PF: > { %p698_p5 = scmp.ge.s32.totalorder %s892_s28, 2  ;;  %s583_s25 = sand.u32 1, %s864_s21  }
 0x1a6   : > { %s584_s14 = scalar_lea.sflag [#allocation5], %s583_s25 }
 0x1a7   : > { %p692_p6 = pnand %p698_p5, %p989_p9 }
 0x1a9   : > { %p693_p7 = pneg %p692_p6 }
 0x1ab   : > { %855 = dma.done.wait (%p693_p7), %s584_s14, 16  }
 0x1ac   : > { %857 = vsyncadd (%p693_p7), %s584_s14, 4294967280  ;;  %s593_s11 = scalar_lea.sflag [#allocation7], %s583_s25 }
 0x1ad   : > { %859 = dma.done.wait (%p693_p7), %s593_s11, 16  }
 0x1ae   : > { %861 = vsyncadd (%p693_p7), %s593_s11, 4294967280  ;;  %s23_s28 = sadd.s32 1, %s892_s28   ;;  %s1195_s21 = smov %s868_s22 }
 0x1af   : > { %p20_p8 = scmp.ge.s32.totalorder %s23_s28, 6   ;;  %s1196_s22 = smov %s872_s23 }
 0x1b0   : > { %s1197_s23 = smov %s997_s13  ;;  %s1198_s24 = smov %s884_s26 }
 0x1b1   : > { %s1199_s25 = smov %s888_s27  ;;  %s1200_s26 = smov %s1203_s7 }
 0x1b2   : > { %s1201_s27 = smov %s1207_s8  ;;  %22 = sbr.rel (!%p20_p8) target bundleno = 11 (0xb), region = 100 }
 0x1b7   :  { %598 = vsyncpa [#allocation5], 1 }
 0x1b8   :  { %600 = vsyncpa [#allocation5 + $0x1], 1 }
 0x1b9   :  { %601 = vsyncpa [#allocation7], 1 }
 0x1ba   :  { %603 = vsyncpa [#allocation7 + $0x1], 1 }

</bundles_post_ra>
